<compile_context>
chip_gen: v6e
topology: v6e:2x2x1
jax: 0.10.0
libtpu: 0.0.40
codegen_flags: <defaults>
</compile_context>

<pallas_src>
import functools

import jax
import jax.numpy as jnp
from jax import lax
from jax.experimental import pallas as pl
from jax.experimental.pallas import tpu as pltpu

_NEG = -1e30  # finite "minus infinity" (avoids inf-inf NaNs and 0*inf NaNs)


def _round_up(v, m):
    return ((v + m - 1) // m) * m


def _vmem_capacity_bytes():
    try:
        return int(pltpu.get_tpu_info().vmem_capacity_bytes)
    except Exception:
        return 64 * 1024 * 1024  # conservative default (v7x per-TensorCore VMEM)


def _rvae_nllk_kernel(x_ref, y_ref, nllk_ref,          # input / output blocks
                      m_sc, l_sc, rsx_sc, axy_sc,      # (tb, 1) f32 VMEM scratch
                      *, n_items, tn):
    n = pl.program_id(1)

    # ---- init per-batch-tile accumulators on the first item tile ------------
    @pl.when(n == 0)
    def _():
        m_sc[...] = jnp.full_like(m_sc, _NEG)
        l_sc[...] = jnp.zeros_like(l_sc)
        rsx_sc[...] = jnp.zeros_like(rsx_sc)
        axy_sc[...] = jnp.zeros_like(axy_sc)

    x = x_ref[...].astype(jnp.float32)
    y = y_ref[...].astype(jnp.float32)

    # ---- mask the ragged last item tile (emitted only when N % tn != 0) -----
    if n_items % tn != 0:
        col = lax.broadcasted_iota(jnp.int32, x.shape, 1)
        valid = (n * tn + col) < n_items
        x = jnp.where(valid, x, 0.0)     # no contribution to rowsum / x*y
        y = jnp.where(valid, y, _NEG)    # no softmax mass

    # ---- online logsumexp over the item axis ---------------------------------
    m_old = m_sc[...]
    m_new = jnp.maximum(m_old, jnp.max(y, axis=-1, keepdims=True))
    alpha = jnp.exp(m_old - m_new)
    l_sc[...] = alpha * l_sc[...] + jnp.sum(jnp.exp(y - m_new), axis=-1,
                                            keepdims=True)
    m_sc[...] = m_new

    # ---- partial sums for  nllk_row = lse_row * rowsum_x_row - sum_xy_row ----
    rsx_sc[...] += jnp.sum(x, axis=-1, keepdims=True)
    axy_sc[...] += jnp.sum(x * y, axis=-1, keepdims=True)

    # ---- finalize on the last item tile --------------------------------------
    @pl.when(n == pl.num_programs(1) - 1)
    def _():
        lse = m_sc[...] + jnp.log(l_sc[...])
        nllk_ref[...] = lse * rsx_sc[...] - axy_sc[...]


def rvae_loss(x, y, mu, logvar, anneal, *, block_b=256, block_n=None):
    """Pallas implementation of rvae_loss.forward(x, y, mu, logvar, anneal).

    x, y may be passed in narrow dtypes (bf16 y, int8/bool x) to save HBM
    bandwidth; the kernel upcasts to f32 internally.
    """
    B, N = x.shape
    x_bytes = jnp.dtype(x.dtype).itemsize
    y_bytes = jnp.dtype(y.dtype).itemsize

    # ---- batch tile: multiple of the sublane packing for the narrowest dtype,
    # and split into >=2 tiles when possible so the "parallel" batch axis can
    # shard across both TensorCores on v7x (no-op on single-TC v5e/v6e).
    sub = max(8, 32 // min(x_bytes, y_bytes, 4))
    tb = _round_up(min(block_b, _round_up(B, sub)), sub)
    if B > sub and pl.cdiv(B, tb) < 2:
        tb = _round_up(pl.cdiv(B, 2), sub)

    # ---- item tile: biggest lane-dim tile that fits the VMEM budget ----------
    vmem_cap = _vmem_capacity_bytes()
    if block_n is None:
        # bytes per lane column: double-buffered x+y blocks + two f32 temporaries
        per_col = tb * (2 * (x_bytes + y_bytes) + 2 * 4)
        budget = max((vmem_cap - (16 << 20)) * 3 // 4, 16 << 20)
        tn_cap = 8192 if (x_bytes + y_bytes) >= 8 else 16384
        tn = min(tn_cap, max(128, (budget // per_col) // 128 * 128))
    else:
        tn = _round_up(block_n, 128)
    tn = min(tn, _round_up(N, 128))

    b_grid = pl.cdiv(B, tb)
    n_grid = pl.cdiv(N, tn)
    out_rows = b_grid * tb  # padded output rows cost nothing (tiny, write-only)

    # VMEM accounting: double-buffered x/y blocks + tile-sized f32 elementwise
    # temporaries (exp(y - m), x*y) + scratch/output + Mosaic-internal headroom.
    vmem_needed = (2 * tb * tn * (x_bytes + y_bytes)
                   + 2 * tb * tn * 4
                   + 6 * tb * 4
                   + (8 << 20))
    vmem_limit = int(min(max(vmem_needed, 32 << 20),
                         max(vmem_cap - (8 << 20), 32 << 20)))

    cost = pl.CostEstimate(
        flops=6 * B * N,
        transcendentals=B * N,
        bytes_accessed=B * N * (x_bytes + y_bytes) + out_rows * 4,
    )

    kernel = functools.partial(_rvae_nllk_kernel, n_items=N, tn=tn)

    nllk_rows = pl.pallas_call(
        kernel,
        out_shape=jax.ShapeDtypeStruct((out_rows, 1), jnp.float32),
        grid_spec=pltpu.PrefetchScalarGridSpec(
            num_scalar_prefetch=0,
            grid=(b_grid, n_grid),
            in_specs=[
                pl.BlockSpec((tb, tn), lambda b, n: (b, n)),   # x
                pl.BlockSpec((tb, tn), lambda b, n: (b, n)),   # y
            ],
            out_specs=pl.BlockSpec((tb, 1), lambda b, n: (b, 0)),
            scratch_shapes=[pltpu.VMEM((tb, 1), jnp.float32)] * 4,
        ),
        compiler_params=pltpu.CompilerParams(
            dimension_semantics=("parallel", "arbitrary"),
            vmem_limit_bytes=vmem_limit,
        ),
        cost_estimate=cost,
    )(x, y)

    # Multinomial NLL: padded / garbage rows are sliced away before the sum.
    n_llk = jnp.sum(nllk_rows[:B])

    # KLD is O(B*D) with D tiny -> plain JAX (keeps the kernel pipeline lean).
    mu32 = mu.astype(jnp.float32)
    lv32 = logvar.astype(jnp.float32)
    kld = -0.5 * jnp.mean(jnp.sum(1.0 + lv32 - mu32 * mu32 - jnp.exp(lv32),
                                  axis=1))
    return n_llk + anneal * kld


def _reference(x, y, mu, logvar, anneal):
    log_sm = jax.nn.log_softmax(y.astype(jnp.float32), axis=-1)
    n_llk = -jnp.sum(log_sm * x.astype(jnp.float32))
    kld = -0.5 * jnp.mean(
        jnp.sum(1.0 + logvar - mu ** 2 - jnp.exp(logvar), axis=1)
    )
    return n_llk + anneal * kld


if __name__ == "__main__":
    key = jax.random.PRNGKey(0)
    k1, k2, k3, k4 = jax.random.split(key, 4)

    # Small shapes that still exercise multi-tile grids AND ragged (unpadded)
    # last tiles on both axes:
    #   B=12 with tb=8   -> 2 batch tiles, last one ragged (4 valid rows)
    #   N=500 with tn=128 -> 4 item tiles, last one ragged (116 valid columns)
    B, N, D = 12, 500, 20
    anneal = 0.47

    # x: implicit-feedback (0/1) interaction matrix; y: decoder logits.
    # (In production, pass x as int8/bool and y as bf16 to cut HBM traffic.)
    x = (jax.random.uniform(k1, (B, N)) < 0.1).astype(jnp.float32)
    y = jax.random.normal(k2, (B, N), dtype=jnp.float32)
    mu = jax.random.normal(k3, (B, D), dtype=jnp.float32) * 0.1
    logvar = jax.random.normal(k4, (B, D), dtype=jnp.float32) * 0.1

    ref = _reference(x, y, mu, logvar, anneal)

    # 1) explicit small tiles: exercises multi-tile grid + in-kernel masking.
    loss_small = jax.block_until_ready(
        rvae_loss(x, y, mu, logvar, anneal, block_b=8, block_n=128))
    assert jnp.allclose(loss_small, ref, rtol=2e-5, atol=1e-3), (loss_small, ref)

    # 2) default auto-tiling path (VMEM-capacity-derived tile sizes).
    loss_auto = jax.block_until_ready(rvae_loss(x, y, mu, logvar, anneal))
    assert jnp.allclose(loss_auto, ref, rtol=2e-5, atol=1e-3), (loss_auto, ref)

    print("KERNEL_OK")
</pallas_src>

<mosaic_0001>
module attributes {stable_mosaic.version = 11 : i64} {
  func.func @_rvae_nllk_kernel(%arg0: i32, %arg1: i32, %arg2: memref<8x128xf32, #tpu.memory_space<vmem>>, %arg3: memref<8x128xf32, #tpu.memory_space<vmem>>, %arg4: memref<8x1xf32, #tpu.memory_space<vmem>>, %arg5: memref<8x1xf32, #tpu.memory_space<vmem>>, %arg6: memref<8x1xf32, #tpu.memory_space<vmem>>, %arg7: memref<8x1xf32, #tpu.memory_space<vmem>>, %arg8: memref<8x1xf32, #tpu.memory_space<vmem>>) attributes {dimension_semantics = [#tpu.dimension_semantics<parallel>, #tpu.dimension_semantics<arbitrary>], iteration_bounds = array<i64: 2, 4>, scalar_prefetch = 0 : i64, scratch_operands = 4 : i64, tpu.core_type = #tpu.core_type<tc>, window_params = [{transform_indices = @transform_0, window_bounds = array<i64: 8, 128>}, {transform_indices = @transform_1, window_bounds = array<i64: 8, 128>}, {transform_indices = @transform_2, window_bounds = array<i64: 8, 1>}]} {
    %c0_i32 = arith.constant 0 : i32
    %0 = arith.cmpi eq, %arg1, %c0_i32 : i32
    %1 = arith.extui %0 : i1 to i32
    %c0_i32_0 = arith.constant 0 : i32
    %2 = arith.cmpi ne, %1, %c0_i32_0 : i32
    scf.if %2 {
      %cst_26 = arith.constant -1.000000e+30 : f32
      %45 = vector.broadcast %cst_26 : f32 to vector<8x1xf32>
      %c0_27 = arith.constant 0 : index
      %c0_28 = arith.constant 0 : index
      %46 = vector.load %arg5[%c0_27, %c0_28] : memref<8x1xf32, #tpu.memory_space<vmem>>, vector<8x1xf32>
      tpu.vector_store %arg5[%c0_27, %c0_28], %45 {strides = array<i32>} : memref<8x1xf32, #tpu.memory_space<vmem>>, vector<8x1xf32>,
      %cst_29 = arith.constant 0.000000e+00 : f32
      %47 = vector.broadcast %cst_29 : f32 to vector<8x1xf32>
      %c0_30 = arith.constant 0 : index
      %c0_31 = arith.constant 0 : index
      %48 = vector.load %arg6[%c0_30, %c0_31] : memref<8x1xf32, #tpu.memory_space<vmem>>, vector<8x1xf32>
      tpu.vector_store %arg6[%c0_30, %c0_31], %47 {strides = array<i32>} : memref<8x1xf32, #tpu.memory_space<vmem>>, vector<8x1xf32>,
      %cst_32 = arith.constant 0.000000e+00 : f32
      %49 = vector.broadcast %cst_32 : f32 to vector<8x1xf32>
      %c0_33 = arith.constant 0 : index
      %c0_34 = arith.constant 0 : index
      %50 = vector.load %arg7[%c0_33, %c0_34] : memref<8x1xf32, #tpu.memory_space<vmem>>, vector<8x1xf32>
      tpu.vector_store %arg7[%c0_33, %c0_34], %49 {strides = array<i32>} : memref<8x1xf32, #tpu.memory_space<vmem>>, vector<8x1xf32>,
      %cst_35 = arith.constant 0.000000e+00 : f32
      %51 = vector.broadcast %cst_35 : f32 to vector<8x1xf32>
      %c0_36 = arith.constant 0 : index
      %c0_37 = arith.constant 0 : index
      %52 = vector.load %arg8[%c0_36, %c0_37] : memref<8x1xf32, #tpu.memory_space<vmem>>, vector<8x1xf32>
      tpu.vector_store %arg8[%c0_36, %c0_37], %51 {strides = array<i32>} : memref<8x1xf32, #tpu.memory_space<vmem>>, vector<8x1xf32>,
    } else {
    }
    %c0 = arith.constant 0 : index
    %c0_1 = arith.constant 0 : index
    %3 = vector.load %arg2[%c0, %c0_1] : memref<8x128xf32, #tpu.memory_space<vmem>>, vector<8x128xf32>
    %c0_2 = arith.constant 0 : index
    %c0_3 = arith.constant 0 : index
    %4 = vector.load %arg3[%c0_2, %c0_3] : memref<8x128xf32, #tpu.memory_space<vmem>>, vector<8x128xf32>
    %5 = tpu.iota {dimensions = array<i32: 1>} : vector<8x128xi32>
    %c128_i32 = arith.constant 128 : i32
    %6 = arith.muli %arg1, %c128_i32 : i32
    %7 = vector.broadcast %6 : i32 to vector<8x128xi32>
    %8 = arith.addi %7, %5 : vector<8x128xi32>
    %c500_i32 = arith.constant 500 : i32
    %9 = vector.broadcast %c500_i32 : i32 to vector<8x128xi32>
    %10 = arith.cmpi slt, %8, %9 : vector<8x128xi32>
    %cst = arith.constant 0.000000e+00 : f32
    %11 = vector.broadcast %cst : f32 to vector<8x128xf32>
    %12 = arith.select %10, %3, %11 : vector<8x128xi1>, vector<8x128xf32>
    %cst_4 = arith.constant -1.000000e+30 : f32
    %13 = vector.broadcast %cst_4 : f32 to vector<8x128xf32>
    %14 = arith.select %10, %4, %13 : vector<8x128xi1>, vector<8x128xf32>
    %c0_5 = arith.constant 0 : index
    %c0_6 = arith.constant 0 : index
    %15 = vector.load %arg5[%c0_5, %c0_6] : memref<8x1xf32, #tpu.memory_space<vmem>>, vector<8x1xf32>
    %cst_7 = arith.constant dense<0xFF800000> : vector<8xf32>
    %16 = vector.multi_reduction <maximumf>, %14, %cst_7 [1] : vector<8x128xf32> to vector<8xf32>
    %17 = vector.shape_cast %16 : vector<8xf32> to vector<8x1xf32>
    %18 = arith.maximumf %15, %17 : vector<8x1xf32>
    %19 = arith.subf %15, %18 : vector<8x1xf32>
    %20 = math.exp %19 : vector<8x1xf32>
    %c0_8 = arith.constant 0 : index
    %c0_9 = arith.constant 0 : index
    %21 = vector.load %arg6[%c0_8, %c0_9] : memref<8x1xf32, #tpu.memory_space<vmem>>, vector<8x1xf32>
    %22 = arith.mulf %20, %21 : vector<8x1xf32>
    %23 = vector.broadcast %18 : vector<8x1xf32> to vector<8x128xf32>
    %24 = arith.subf %14, %23 : vector<8x128xf32>
    %25 = math.exp %24 : vector<8x128xf32>
    %cst_10 = arith.constant dense<0.000000e+00> : vector<8xf32>
    %26 = vector.multi_reduction <add>, %25, %cst_10 [1] : vector<8x128xf32> to vector<8xf32>
    %27 = vector.shape_cast %26 : vector<8xf32> to vector<8x1xf32>
    %28 = arith.addf %22, %27 : vector<8x1xf32>
    %c0_11 = arith.constant 0 : index
    %c0_12 = arith.constant 0 : index
    %29 = vector.load %arg6[%c0_11, %c0_12] : memref<8x1xf32, #tpu.memory_space<vmem>>, vector<8x1xf32>
    tpu.vector_store %arg6[%c0_11, %c0_12], %28 {strides = array<i32>} : memref<8x1xf32, #tpu.memory_space<vmem>>, vector<8x1xf32>,
    %c0_13 = arith.constant 0 : index
    %c0_14 = arith.constant 0 : index
    %30 = vector.load %arg5[%c0_13, %c0_14] : memref<8x1xf32, #tpu.memory_space<vmem>>, vector<8x1xf32>
    tpu.vector_store %arg5[%c0_13, %c0_14], %18 {strides = array<i32>} : memref<8x1xf32, #tpu.memory_space<vmem>>, vector<8x1xf32>,
    %c0_15 = arith.constant 0 : index
    %c0_16 = arith.constant 0 : index
    %31 = vector.load %arg7[%c0_15, %c0_16] : memref<8x1xf32, #tpu.memory_space<vmem>>, vector<8x1xf32>
    %cst_17 = arith.constant dense<0.000000e+00> : vector<8xf32>
    %32 = vector.multi_reduction <add>, %12, %cst_17 [1] : vector<8x128xf32> to vector<8xf32>
    %33 = vector.shape_cast %32 : vector<8xf32> to vector<8x1xf32>
    %34 = arith.addf %31, %33 : vector<8x1xf32>
    %c0_18 = arith.constant 0 : index
    %c0_19 = arith.constant 0 : index
    %35 = vector.load %arg7[%c0_18, %c0_19] : memref<8x1xf32, #tpu.memory_space<vmem>>, vector<8x1xf32>
    tpu.vector_store %arg7[%c0_18, %c0_19], %34 {strides = array<i32>} : memref<8x1xf32, #tpu.memory_space<vmem>>, vector<8x1xf32>,
    %c0_20 = arith.constant 0 : index
    %c0_21 = arith.constant 0 : index
    %36 = vector.load %arg8[%c0_20, %c0_21] : memref<8x1xf32, #tpu.memory_space<vmem>>, vector<8x1xf32>
    %37 = arith.mulf %12, %14 : vector<8x128xf32>
    %cst_22 = arith.constant dense<0.000000e+00> : vector<8xf32>
    %38 = vector.multi_reduction <add>, %37, %cst_22 [1] : vector<8x128xf32> to vector<8xf32>
    %39 = vector.shape_cast %38 : vector<8xf32> to vector<8x1xf32>
    %40 = arith.addf %36, %39 : vector<8x1xf32>
    %c0_23 = arith.constant 0 : index
    %c0_24 = arith.constant 0 : index
    %41 = vector.load %arg8[%c0_23, %c0_24] : memref<8x1xf32, #tpu.memory_space<vmem>>, vector<8x1xf32>
    tpu.vector_store %arg8[%c0_23, %c0_24], %40 {strides = array<i32>} : memref<8x1xf32, #tpu.memory_space<vmem>>, vector<8x1xf32>,
    %c3_i32 = arith.constant 3 : i32
    %42 = arith.cmpi eq, %arg1, %c3_i32 : i32
    %43 = arith.extui %42 : i1 to i32
    %c0_i32_25 = arith.constant 0 : i32
    %44 = arith.cmpi ne, %43, %c0_i32_25 : i32
    scf.if %44 {
      %c0_26 = arith.constant 0 : index
      %c0_27 = arith.constant 0 : index
      %45 = vector.load %arg5[%c0_26, %c0_27] : memref<8x1xf32, #tpu.memory_space<vmem>>, vector<8x1xf32>
      %c0_28 = arith.constant 0 : index
      %c0_29 = arith.constant 0 : index
      %46 = vector.load %arg6[%c0_28, %c0_29] : memref<8x1xf32, #tpu.memory_space<vmem>>, vector<8x1xf32>
      %47 = math.log %46 : vector<8x1xf32>
      %48 = arith.addf %45, %47 : vector<8x1xf32>
      %c0_30 = arith.constant 0 : index
      %c0_31 = arith.constant 0 : index
      %49 = vector.load %arg7[%c0_30, %c0_31] : memref<8x1xf32, #tpu.memory_space<vmem>>, vector<8x1xf32>
      %50 = arith.mulf %48, %49 : vector<8x1xf32>
      %c0_32 = arith.constant 0 : index
      %c0_33 = arith.constant 0 : index
      %51 = vector.load %arg8[%c0_32, %c0_33] : memref<8x1xf32, #tpu.memory_space<vmem>>, vector<8x1xf32>
      %52 = arith.subf %50, %51 : vector<8x1xf32>
      %c0_34 = arith.constant 0 : index
      %c0_35 = arith.constant 0 : index
      %53 = vector.load %arg4[%c0_34, %c0_35] : memref<8x1xf32, #tpu.memory_space<vmem>>, vector<8x1xf32>
      tpu.vector_store %arg4[%c0_34, %c0_35], %52 {strides = array<i32>} : memref<8x1xf32, #tpu.memory_space<vmem>>, vector<8x1xf32>,
    } else {
    }
    return
  }
  func.func @transform_0(%arg0: i32, %arg1: i32) -> (i32, i32) {
    %c0_i32 = arith.constant 0 : i32
    return %arg0, %arg1 : i32, i32
  }
  func.func @transform_1(%arg0: i32, %arg1: i32) -> (i32, i32) {
    %c0_i32 = arith.constant 0 : i32
    return %arg0, %arg1 : i32, i32
  }
  func.func @transform_2(%arg0: i32, %arg1: i32) -> (i32, i32) {
    %c0_i32 = arith.constant 0 : i32
    %c0_i32_0 = arith.constant 0 : i32
    return %arg0, %c0_i32 : i32, i32
  }
}

</mosaic_0001>

<bundles_post_ra>
// kernel: tpu_custom_call.1
= control target key start
LH: loop header
LB: loop body
LE: loop exit
PB: predicated region body
PF: predicated region fallthrough
CT: control target
= control target key end

     0   :  { %7 = vsyncpa [#allocation7], 0  ;;  %s808_s0 = inlined_call_operand.hbm [shape: f32[12,500], index: 0, kind: input, shape index: {}]   ;;  %s809_s1 = inlined_call_operand.hbm [shape: f32[12,500], index: 1, kind: input, shape index: {}]   ;;  %s810_s2 = inlined_call_operand.vmem [shape: f32[16,1], index: 2, kind: output, shape index: {}]  }
   0x1   :  { %9 = vsyncpa [#allocation7 + $0x1], 0 }
   0x2   :  { %10 = vsyncpa [#allocation9], 0 }
   0x3   :  { %12 = vsyncpa [#allocation9 + $0x1], 0  ;;  %s639_s9 = smov 0   ;;  %s641_s10 = smov 0  }
   0x4   :  { %s643_s11 = smov 0   ;;  %s645_s12 = smov 0  }
   0x5   :  { %s647_s13 = smov 0   ;;  %s649_s14 = smov 0  }
   0x6   :  { %s651_s15 = smov 0   ;;  %s653_s16 = smov 0  }
   0x7 LB: > { %s386_s17 = sadd.s32 4294967295, %s617_s16   ;;  %s27_s18 = sadd.s32 1, %s609_s14  ;;  %s617_s16 = sphi %s653_s16, %s18_s16   ;;  %s613_s15 = sphi %s651_s15, %s821_s15   ;;  %s609_s14 = sphi %s649_s14, %s820_s14   ;;  %s605_s13 = sphi %s647_s13, %s819_s13   ;;  %s601_s12 = sphi %s645_s12, %s818_s12   ;;  %s597_s11 = sphi %s643_s11, %s817_s11   ;;  %s593_s10 = sphi %s641_s10, %s816_s10   ;;  %s589_s9 = sphi %s639_s9, %s815_s9  }
   0x8   : > { %p28_p0 = scmp.ge.s32.totalorder %s27_s18, 4  ;;  %s30_s19 = sadd.s32 1, %s613_s15 }
   0x9   : > { %s39_s20 = sadd.s32 1, %s597_s11  ;;  %p46_p1 = scmp.ne.s32.totalorder %s597_s11, %s593_s10 }
   0xa   : > { %s823_s18 = smov (%p28_p0, %s27_s18), 0  ;;  %s825_s19 = smov (!%p28_p0, %s30_s19), %s613_s15 }
   0xb   : > { %s35_s21 = ssub.s32 %s609_s14, %s823_s18  ;;  %p47_p2 = scmp.eq.s32.totalorder %s617_s16, 0 }
   0xc   : > { %p32_p3 = scmp.ge.s32.totalorder %s825_s19, 2  ;;  %p52_p4 = scmp.ne.s32.totalorder %s593_s10, %s589_s9 }
   0xd   : > { %p690_p5 = por %p47_p2, %p46_p1  ;;  %p53_p6 = scmp.eq.s32.totalorder %s386_s17, 0 }
   0xe   : > { %s827_s19 = smov (%p32_p3, %s825_s19), 0  ;;  %p416_p8 = scmp.lt.s32.totalorder %s617_s16, 8 }
   0xf   : > { %p696_p7 = por %p53_p6, %p52_p4  ;;  %s34_s24 = ssub.s32 %s613_s15, %s827_s19 }
  0x10   : > { %s36_s25 = sor.u32 %s35_s21, %s34_s24  ;;  %s704_s26 = sand.u32 1, %s597_s11  }
  0x11   : > { %p37_p9 = scmp.eq.s32.totalorder %s36_s25, 0  ;;  %s390_s27 = sshll.u32 %s704_s26, 3 }
  0x12   : > { %s391_s28 = sshll.u32 %s613_s15, 2  ;;  %s134_s4 = scalar_lea.vmem [#allocation6], %s390_s27 }
  0x13   : > { %s709_s29 = scalar_select %p37_p9, %s597_s11, %s39_s20  }
  0x14   : > { %s139_s30 = sadd.s32 %s609_s14, %s391_s28  ;;  %s143_s5 = sshll.u32 %s134_s4, 4  ;;  %s144_s5 = int_to_ptr.vmem [resolvable:$true] %s143_s5 }
  0x15   : > { %s392_s3 = sshll.u32 %s139_s30, 7  ;;  %p721_p10 = pnand %p416_p8, %p690_p5 }
  0x16   : > { %s141_s8 = scalar_lea.hbm %s808_s0, %s392_s3  ;;  %p396_p11 = scmp.ge.s32.totalorder %s617_s16, 1 }
  0x17   : > { %p168_p12 = scmp.lt.s32.totalorder %s617_s16, 9  ;;  %s131_s17 = scalar_lea.sflag [#allocation7], %s704_s26 }
  0x18   : > { %p493_p13 = pneg %p721_p10  ;;  %s504_s20 = scalar_lea.vmem %s144_s5, 128 }
  0x19   : > { %p505_p0 = scmp.ne.s32.totalorder %s144_s5, %s504_s20  ;;  %s619_s21 = smov [#allocation6]  }
  0x1a   : > { %s509_s22 = sshll.u32 %s619_s21, 4  ;;  %s510_s22 = int_to_ptr.vmem [resolvable:$false] %s509_s22 }
  0x1b   : > { %p507_p1 = pnand %p505_p0, %p493_p13  ;;  %s511_s24 = scalar_lea.vmem %s510_s22, 256 }
  0x1c   : > { %p512_p3 = scmp.lt.s32.totalorder %s144_s5, %s510_s22  ;;  %p513_p4 = scmp.lt.s32.totalorder %s511_s24, %s504_s20 }
  0x1d   : > { %p508_p2 = pneg %p507_p1 }
  0x1e   : > { %p514_p5 = por %p513_p4, %p512_p3 }
  0x20   : > { %p515_p6 = pnand %p514_p5, %p508_p2 }
  0x22   : > { %518 = shalt.err (!%p515_p6)
}
  0x23   : > { %412 = dma.hbm_to_vmem [thread:$0]  (!%p721_p10), %s141_s8, 128, %s144_s5, %s131_s17  }
  0x24   : > { %p739_p8 = pnand %p396_p11, %p168_p12  ;;  %s161_s4 = scalar_lea.hbm %s809_s1, %s392_s3 }
  0x25   : > { %s154_s6 = scalar_lea.vmem [#allocation8], %s390_s27  ;;  %s151_s20 = scalar_lea.sflag [#allocation9], %s704_s26 }
  0x26   : > { %s163_s7 = sshll.u32 %s154_s6, 4  ;;  %s620_s5 = smov [#allocation8]   ;;  %s164_s7 = int_to_ptr.vmem [resolvable:$true] %s163_s7 }
  0x27   : > { %s532_s21 = scalar_lea.vmem %s164_s7, 128  ;;  %s537_s8 = sshll.u32 %s620_s5, 4  ;;  %s538_s8 = int_to_ptr.vmem [resolvable:$false] %s537_s8 }
  0x28   : > { %p533_p9 = scmp.ne.s32.totalorder %s164_s7, %s532_s21  ;;  %s539_s17 = scalar_lea.vmem %s538_s8, 256 }
  0x29   : > { %p540_p11 = scmp.lt.s32.totalorder %s164_s7, %s538_s8  ;;  %p541_p12 = scmp.lt.s32.totalorder %s539_s17, %s532_s21 }
  0x2a   : > { %p535_p0 = pnand %p533_p9, %p493_p13 }
  0x2b   : > { %p542_p2 = por %p541_p12, %p540_p11 }
  0x2c   : > { %p536_p1 = pneg %p535_p0 }
  0x2e   : > { %p543_p3 = pnand %p542_p2, %p536_p1 }
  0x30   : > { %546 = shalt.err (!%p543_p3)
}
  0x31   : > { %415 = dma.hbm_to_vmem [thread:$0]  (!%p721_p10), %s161_s4, 128, %s164_s7, %s151_s20  }
  0x32   : > { %172 = sbr.rel (%p739_p8) target bundleno = 529 (0x211), region = 28  ;;  %s174_s26 = sand.u32 (!%p739_p8), 1, %s593_s10  }
  0x33   : > { %s397_s27 = sshll.u32 (!%p739_p8), %s174_s26, 3  ;;  %s175_s3 = scalar_lea.sflag (!%p739_p8), [#allocation7], %s174_s26 }
  0x34   : > { %s757_s22 = scalar_lea.vmem (!%p739_p8), [#allocation6], %s397_s27 }
  0x37   : > { %580 = dma.done.wait (%p696_p7), %s175_s3, 128  }
  0x38   : > { %582 = vsyncadd (%p696_p7), %s175_s3, 4294967168  ;;  %s184_s24 = scalar_lea.sflag [#allocation9], %s174_s26  ;;  %s187_s28 = scalar_lea.vmem [#allocation8], %s397_s27 }
  0x39   : > { %584 = dma.done.wait (%p696_p7), %s184_s24, 128  }
  0x3a   : > { %586 = vsyncadd (%p696_p7), %s184_s24, 4294967168  ;;  %p212_p10 = scmp.lt.s32.totalorder %s605_s13, 1  ;;  %p400_p13 = scmp.ne.s32.totalorder %s601_s12, 0 }
  0x3c   : > { %s829_s13 = smov (!%p212_p10, %s605_s13), 1  ;;  %219 = sbr.rel (%p400_p13) target bundleno = 68 (0x44), region = 40 }
  0x3d   : > { %s399_s9 = sshll.u32 %s829_s13, 3 }
  0x3e   : > { %s772_s4 = scalar_lea.vmem %s810_s2, %s399_s9 }
  0x41   : > { %vm220_vm0 = vcmask 7168   ;;  %v621_v0 = vmov -1e+30   ;;  %v622_v1 = vmov 0.0  }
  0x42   : > { %221 = vst.msk [vmem:[#allocation2] sm:$0xff] %vm220_vm0, %v621_v0  ;;  %222 = vst.msk [vmem:[#allocation3] sm:$0xff] %vm220_vm0, %v622_v1 }
  0x43   : > { %223 = vst.msk [vmem:[#allocation4] sm:$0xff] %vm220_vm0, %v622_v1  ;;  %224 = vst.msk [vmem:[#allocation5] sm:$0xff] %vm220_vm0, %v622_v1 }
  0x44 PF: > { %v227_v2 = vlaneseq  ;;  %s401_s23 = sshll.u32 %s601_s12, 7  ;;  %v226_v5 = vld [vmem:[%s187_s28] sm:$0xff]  ;;  %v623_v8 = vmov 0   ;;  %vm255_vm2 = vcmask 7168   ;;  %v225_v13 = vld [vmem:[%s757_s22] sm:$0xff]  ;;  %p402_p7 = scmp.ne.s32.totalorder %s601_s12, 3 }
  0x45   : > { %v230_v3 = vstv %s401_s23  ;;  %484 = vset.pattern.permute.xlu0 %v623_v8 }
  0x46   : > { %v228_v4 = vand.u32 127, %v227_v2 }
  0x48   : > { %v231_v6 = vadd.s32 %v230_v3, %v228_v4 }
  0x49   : > { %v235_v9 = vld [vmem:[#allocation2] sm:$0xff]  ;;  %v242_v25 = vld [vmem:[#allocation3] sm:$0xff] }
  0x4a   : > { %vm232_vm1 = vcmp.lt.s32.totalorder %v231_v6, 500  ;;  %v258_v18 = vld [vmem:[#allocation4] sm:$0xff]  ;;  %v263_v29 = vld [vmem:[#allocation5] sm:$0xff] }
  0x4b   : > { %v234_v7 = vsel %vm232_vm1, %v226_v5, -1e+30  ;;  %v233_v14 = vsel %vm232_vm1, %v225_v13, 0.0 }
  0x4c   : > { %236 = vmax.xlane.f32.xlu0 %v234_v7  ;;  %259 = vadd.xlane.f32.xlu1 %v233_v14  ;;  %v264_v22 = vmul.f32 %v234_v7, %v233_v14 }
  0xd5   : > { %v237_v10 = vpop.xlane.xlu0 %236  ;;  %v260_v19 = vpop.xlane.xlu1 %259 }
  0xd6   : > { %v238_v11 = vmax.f32 %v235_v9, %v237_v10  ;;  %v261_v20 = vadd.f32 %v260_v19, %v258_v18 }
  0xd8   : > { %v239_v12 = vsub.f32 %v235_v9, %v238_v11  ;;  %257 = vst.msk [vmem:[#allocation2] sm:$0xff] %vm255_vm2, %v238_v11  ;;  %246 = vperm.xlu0 %484, %v238_v11   ;;  %262 = vst.msk [vmem:[#allocation4] sm:$0xff] %vm255_vm2, %v261_v20 }
  0xda   : > { %v240_v23 = vmul.f32 1.442695, %v239_v12 }
 0x153   : > { %v247_v15 = vpop.permute.xlu0 %246 }
 0x154   : > { %v249_v16 = vsub.f32 %v234_v7, %v247_v15 }
 0x156   : > { %v250_v17 = vmul.f32 1.442695, %v249_v16 }
 0x158   : > { %485 = vpow2.f32 %v250_v17 }
 0x159   : > { %487 = vpow2.f32 %v240_v23 }
 0x165   : > { %v486_v21 = vpop.eup %485 }
 0x166   : > { %252 = vadd.xlane.f32.xlu1 %v486_v21  ;;  %v488_v24 = vpop.eup %487 }
 0x167   : > { %v243_v26 = vmul.f32 %v488_v24, %v242_v25 }
 0x16a   : > { %265 = vadd.xlane.f32.xlu1 %v264_v22 }
 0x1ef   : > { %v253_v27 = vpop.xlane.xlu1 %252 }
 0x1f0   : > { %v254_v28 = vadd.f32 %v253_v27, %v243_v26 }
 0x1f2   : > { %256 = vst.msk [vmem:[#allocation3] sm:$0xff] %vm255_vm2, %v254_v28  ;;  %272 = sbr.rel (%p402_p7) target bundleno = 529 (0x211), region = 44 }
 0x1f3   : > { %v266_v30 = vpop.xlane.xlu1 %265 }
 0x1f4   : > { %v267_v31 = vadd.f32 %v266_v30, %v263_v29 }
 0x1f6   : > { %268 = vst.msk [vmem:[#allocation5] sm:$0xff] %vm255_vm2, %v267_v31 }
 0x1f7   : > { %v273_v34 = vld [vmem:[#allocation2] sm:$0xff]  ;;  %v278_v36 = vld [vmem:[#allocation4] sm:$0xff] }
 0x1f9   : > { %v274_v32 = vld [vmem:[#allocation3] sm:$0xff] }
 0x1fa   : > { %489 = vlog2.f32 %v274_v32 }
 0x1fd   : > { %v280_v38 = vld [vmem:[#allocation5] sm:$0xff] }
 0x207   : > { %v490_v33 = vpop.eup %489 }
 0x208   : > { %v276_v35 = vmul.f32 0.6931472, %v490_v33 }
 0x20a   : > { %v277_v37 = vadd.f32 %v276_v35, %v273_v34 }
 0x20c   : > { %v279_v39 = vmul.f32 %v278_v36, %v277_v37 }
 0x20e   : > { %v281_v40 = vsub.f32 %v279_v39, %v280_v38 }
 0x210   : > { %282 = vst.msk [vmem:[%s772_s4] sm:$0xff] %vm255_vm2, %v281_v40 }
 0x211 PF: > { %s18_s16 = sadd.s32 1, %s617_s16   ;;  %s815_s9 = smov %s593_s10 }
 0x212   : > { %p15_p4 = scmp.ge.s32.totalorder %s18_s16, 10   ;;  %s816_s10 = smov %s597_s11 }
 0x213   : > { %s817_s11 = smov %s709_s29  ;;  %s818_s12 = smov %s609_s14 }
 0x214   : > { %s819_s13 = smov %s613_s15  ;;  %s820_s14 = smov %s823_s18 }
 0x215   : > { %s821_s15 = smov %s827_s19  ;;  %17 = sbr.rel (!%p15_p4) target bundleno = 7 (0x7), region = 89 }
 0x21a   :  { %302 = vsyncpa [#allocation7], 1 }
 0x21b   :  { %304 = vsyncpa [#allocation7 + $0x1], 1 }
 0x21c   :  { %305 = vsyncpa [#allocation9], 1 }
 0x21d   :  { %307 = vsyncpa [#allocation9 + $0x1], 1 }

</bundles_post_ra>
